<compile_context>
chip_gen: v7x
topology: tpu7x:2x2x1
jax: 0.10.0
libtpu: 0.0.40
codegen_flags: <defaults>
</compile_context>

<pallas_src>
import functools
import math

import jax
import jax.numpy as jnp
from jax.experimental import pallas as pl
from jax.experimental.pallas import tpu as pltpu


# --------------------------------------------------------------------------- #
# Fused Pallas kernel: per-environment 2-layer GCN + NLL loss
# --------------------------------------------------------------------------- #
def _gcn_env_loss_kernel(ct_ref, dinv_ref, x_ref, w0_ref, b0_ref, w1_ref, b1_ref,
                         yoh_ref, loss_ref):
    """One grid step == one edited environment k.

    ct_ref   : (1, n, n) bf16  Ct[t, s] = Chat_k[s, t] (edited adjacency + self loops, transposed)
    dinv_ref : (1, n, 1) f32   in-degree^-1/2 of Chat_k
    x_ref    : (n, d)    bf16  node features
    w0,b0    : (d, h) bf16 / (1, h) f32   first GCNConv
    w1,b1    : (h, c) bf16 / (1, c) f32   second GCNConv
    yoh_ref  : (n, c)    f32   one-hot labels
    loss_ref : (1, 1, 128) f32 per-env NLL loss broadcast across lanes (lane-dense store)
    """
    ct = ct_ref[0]                       # (n, n)
    dinv = dinv_ref[0]                   # (n, 1)
    n = ct.shape[0]

    # ---- GCNConv 1:  H = relu( D^-1/2 Chat^T D^-1/2 (X W0) + b0 ) -------------
    xw = jnp.dot(x_ref[...], w0_ref[...], preferred_element_type=jnp.float32)     # (n, h)
    agg0 = jnp.dot(ct, (dinv * xw).astype(jnp.bfloat16),
                   preferred_element_type=jnp.float32)
    h = jnp.maximum(dinv * agg0 + b0_ref[...], 0.0)
    # TODO(synk): BatchNorm + dropout of the reference GCN omitted (eval-mode identity).

    # ---- GCNConv 2:  logits = D^-1/2 Chat^T D^-1/2 (H W1) + b1 ----------------
    hw = jnp.dot(h.astype(jnp.bfloat16), w1_ref[...],
                 preferred_element_type=jnp.float32)                              # (n, c)
    agg1 = jnp.dot(ct, (dinv * hw).astype(jnp.bfloat16),
                   preferred_element_type=jnp.float32)
    logits = dinv * agg1 + b1_ref[...]

    # ---- sup_loss (default branch): NLLLoss(log_softmax(logits), y) -----------
    m = jnp.max(logits, axis=1, keepdims=True)
    z = logits - m
    lse = jnp.log(jnp.sum(jnp.exp(z), axis=1, keepdims=True))
    logp = z - lse
    loss = -jnp.sum(logp * yoh_ref[...]) * (1.0 / n)
    loss_ref[...] = jnp.broadcast_to(loss, loss_ref.shape).astype(jnp.float32)


def fused_env_losses(Ct, dinv, x, params, yoh):
    """Run the fused 2-layer-GCN + NLL kernel over all K environments in one launch."""
    K, n, _ = Ct.shape
    d = x.shape[1]
    h = params["w0"].shape[1]
    c = params["w1"].shape[1]

    ct_b = Ct.astype(jnp.bfloat16)          # binary -> exact in bf16
    x_b = x.astype(jnp.bfloat16)
    w0_b = params["w0"].astype(jnp.bfloat16)
    w1_b = params["w1"].astype(jnp.bfloat16)
    b0 = params["b0"].astype(jnp.float32)
    b1 = params["b1"].astype(jnp.float32)
    dinv = dinv.astype(jnp.float32)
    yoh = yoh.astype(jnp.float32)

    flops = K * 2 * n * (d * h + n * h + h * c + n * c)
    bytes_accessed = (ct_b.size * 2 + dinv.size * 4 + x_b.size * 2 + w0_b.size * 2 +
                      b0.size * 4 + w1_b.size * 2 + b1.size * 4 + yoh.size * 4 +
                      K * 128 * 4)
    cost = pl.CostEstimate(flops=int(flops), transcendentals=int(K * n * c),
                           bytes_accessed=int(bytes_accessed))

    # Scoped-VMEM budget: double-buffered per-env blocks + resident operands + f32
    # intermediates, with headroom; clamped to 48 MiB (< v7x's 64 MiB physical VMEM).
    per_env_blocks = n * n * 2 + n * 4 + 128 * 4
    resident = n * d * 2 + d * h * 2 + h * 4 + h * c * 2 + c * 4 + n * c * 4
    intermediates = 6 * n * max(d, h, c) * 4
    vmem_limit = int(min(48 << 20,
                         max(16 << 20,
                             2 * per_env_blocks + resident + intermediates + (2 << 20))))

    out = pl.pallas_call(
        _gcn_env_loss_kernel,
        out_shape=jax.ShapeDtypeStruct((K, 1, 128), jnp.float32),
        grid=(K,),
        in_specs=[
            pl.BlockSpec((1, n, n), lambda k: (k, 0, 0)),   # Ct_k   (per-env, pipelined)
            pl.BlockSpec((1, n, 1), lambda k: (k, 0, 0)),   # dinv_k (per-env)
            pl.BlockSpec((n, d), lambda k: (0, 0)),         # x      (resident across k)
            pl.BlockSpec((d, h), lambda k: (0, 0)),         # w0
            pl.BlockSpec((1, h), lambda k: (0, 0)),         # b0
            pl.BlockSpec((h, c), lambda k: (0, 0)),         # w1
            pl.BlockSpec((1, c), lambda k: (0, 0)),         # b1
            pl.BlockSpec((n, c), lambda k: (0, 0)),         # one-hot labels
        ],
        out_specs=pl.BlockSpec((1, 1, 128), lambda k: (k, 0, 0)),
        compiler_params=pltpu.CompilerParams(
            dimension_semantics=("parallel",),              # env axis -> TC sharding
            vmem_limit_bytes=vmem_limit),
        cost_estimate=cost,
    )(ct_b, dinv, x_b, w0_b, b0, w1_b, b1, yoh)
    return out[:, 0, 0]                                     # (K,) per-environment losses


# --------------------------------------------------------------------------- #
# JAX glue: Graph_Editer sampling + dense adjacency construction
# --------------------------------------------------------------------------- #
def build_dense_adj(edge_index, n):
    """to_dense_adj(edge_index)[0] as a binary float matrix (duplicate edges merged)."""
    src, dst = edge_index[0], edge_index[1]
    return jnp.zeros((n, n), jnp.float32).at[src, dst].set(1.0)


def edit_graphs(B, A, num_sample, key):
    """Graph_Editer.forward for every k.

    Returns:
      Ct   : (K, n, n) bf16  edited adjacency + missing self loops, TRANSPOSED (Ct[t, s])
      dinv : (K, n, 1) f32   in-degree^-1/2 of the self-looped edited graph
      logp : (K,)      f32   log-prob term of the sampled edit
    """
    K, n, _ = B.shape
    keys = jax.random.split(key, K)
    col_idx = jnp.broadcast_to(jnp.arange(n)[:, None], (n, num_sample))
    eye = jnp.eye(n, dtype=jnp.float32)

    def one_env(Bk, k_key):
        # P = softmax(Bk, dim=0); S = torch.multinomial(P, num_sample)  (per row, w/o
        # replacement) -> Gumbel-top-k trick (distribution-equivalent sampling).
        logw = jax.nn.log_softmax(Bk, axis=0)
        gumbel = -jnp.log(-jnp.log(jax.random.uniform(k_key, (n, n)) + 1e-20) + 1e-20)
        S = jax.lax.top_k(logw + gumbel, num_sample)[1]              # (n, num_sample)
        M = jnp.zeros((n, n), jnp.float32).at[S, col_idx].set(1.0)   # M[S[i,j], i] = 1
        C = A + M * (1.0 - 2.0 * A)                                  # flip where M == 1
        log_p = jnp.sum(jnp.sum(Bk[S, col_idx], axis=1) - jax.nn.logsumexp(Bk, axis=0))
        # GCNConv gcn_norm on dense_to_sparse(C): add missing self loops, D^-1/2 . D^-1/2
        Chat = jnp.maximum(C, eye)
        deg = jnp.sum(Chat, axis=0)                                  # in-degree at target
        dinv = jax.lax.rsqrt(deg)                                    # deg >= 1 (self loops)
        return Chat.T.astype(jnp.bfloat16), dinv[:, None], log_p

    Ct, dinv, log_p = jax.vmap(one_env)(B, keys)
    return Ct, dinv, log_p


def init_gcn_params(key, d, hidden, c):
    k0, k1 = jax.random.split(key)

    def glorot(k, fan_in, fan_out):
        lim = math.sqrt(6.0 / (fan_in + fan_out))
        return jax.random.uniform(k, (fan_in, fan_out), jnp.float32, -lim, lim)

    return {
        "w0": glorot(k0, d, hidden), "b0": jnp.zeros((1, hidden), jnp.float32),
        "w1": glorot(k1, hidden, c), "b1": jnp.zeros((1, c), jnp.float32),
    }


@functools.partial(jax.jit, static_argnames=("num_sample",))
def model_forward(gcn_params, B, edge_index, x, y, key, *, num_sample):
    """EERM Model.forward: (Var, Mean, Log_p) over the K edited environments."""
    K, n, _ = B.shape
    c = gcn_params["w1"].shape[1]
    A = build_dense_adj(edge_index, n)
    Ct, dinv, log_p = edit_graphs(B, A, num_sample, key)
    yoh = jax.nn.one_hot(y.reshape(-1), c, dtype=jnp.float32)
    loss_env = fused_env_losses(Ct, dinv, x, gcn_params, yoh)        # (K,)
    mean = jnp.mean(loss_env)
    var = jnp.sum((loss_env - mean) ** 2) / (K - 1)                  # torch.var_mean (unbiased)
    return var, mean, jnp.sum(log_p)


def env_losses_reference(Ct, dinv, x, params, yoh):
    """Pure-JAX f32 reference of the fused kernel (correctness self-check)."""
    def one(ct, di):
        ct = ct.astype(jnp.float32)
        xw = x @ params["w0"]
        h = jnp.maximum(di * (ct @ (di * xw)) + params["b0"], 0.0)
        logits = di * (ct @ (di * (h @ params["w1"]))) + params["b1"]
        logp = jax.nn.log_softmax(logits, axis=1)
        return -jnp.sum(logp * yoh) / x.shape[0]

    return jax.vmap(one)(Ct, dinv)


# --------------------------------------------------------------------------- #
# Main
# --------------------------------------------------------------------------- #
if __name__ == "__main__":
    key = jax.random.PRNGKey(0)
    n, d, c, hidden = 128, 16, 4, 64           # nodes / features / classes / hidden_channels
    K, num_sample, E = 3, 16, 1024             # environments / edits per node / edges

    k_ei, k_x, k_y, k_b, k_w, k_s = jax.random.split(key, 6)
    edge_index = jax.random.randint(k_ei, (2, E), 0, n, dtype=jnp.int32)
    x = jax.random.normal(k_x, (n, d), jnp.float32)
    y = jax.random.randint(k_y, (n, 1), 0, c, dtype=jnp.int32)
    B = jax.random.uniform(k_b, (K, n, n), jnp.float32)   # Graph_Editer.B (reset_parameters)
    gcn_params = init_gcn_params(k_w, d, hidden, c)

    var, mean, log_p = model_forward(gcn_params, B, edge_index, x, y, k_s,
                                     num_sample=num_sample)
    jax.block_until_ready((var, mean, log_p))

    # ---- self-check of the fused kernel against a pure-JAX f32 reference -------
    A = build_dense_adj(edge_index, n)
    Ct, dinv, _lp = edit_graphs(B, A, num_sample, k_s)
    yoh = jax.nn.one_hot(y.reshape(-1), c, dtype=jnp.float32)
    loss_pallas = fused_env_losses(Ct, dinv, x, gcn_params, yoh)
    loss_ref = env_losses_reference(Ct, dinv, x, gcn_params, yoh)
    jax.block_until_ready((loss_pallas, loss_ref))

    assert var.shape == () and mean.shape == () and log_p.shape == ()
    assert loss_pallas.shape == (K,)
    assert bool(jnp.all(jnp.isfinite(jnp.stack([var, mean, log_p]))))
    assert bool(jnp.allclose(loss_pallas, loss_ref, rtol=5e-2, atol=5e-2)), (loss_pallas, loss_ref)
    assert bool(jnp.allclose(mean, jnp.mean(loss_ref), rtol=5e-2, atol=5e-2))
    print("KERNEL_OK")
</pallas_src>

<mosaic_0001>
module attributes {stable_mosaic.version = 11 : i64} {
  func.func private @main(%arg0: i32) attributes {dimension_semantics = [#tpu.dimension_semantics<core_parallel>], iteration_bounds = array<i64: 2>, tpu.core_type = #tpu.core_type<sc_scalar_subcore>, window_params = []} {
    return
  }
}

module attributes {stable_mosaic.version = 11 : i64} {
  func.func private @main(%arg0: i32) attributes {dimension_semantics = [#tpu.dimension_semantics<core_parallel>], iteration_bounds = array<i64: 2>, tpu.core_type = #tpu.core_type<sc_scalar_subcore>, window_params = []} {
    return
  }
}

module attributes {stable_mosaic.version = 11 : i64} {
  func.func @_gcn_env_loss_kernel(%arg0: i32, %arg1: memref<1x128x128xbf16, #tpu.memory_space<vmem>>, %arg2: memref<1x128x1xf32, #tpu.memory_space<vmem>>, %arg3: memref<128x16xbf16, #tpu.memory_space<vmem>>, %arg4: memref<16x64xbf16, #tpu.memory_space<vmem>>, %arg5: memref<1x64xf32, #tpu.memory_space<vmem>>, %arg6: memref<64x4xbf16, #tpu.memory_space<vmem>>, %arg7: memref<1x4xf32, #tpu.memory_space<vmem>>, %arg8: memref<128x4xf32, #tpu.memory_space<vmem>>, %arg9: memref<1x1x128xf32, #tpu.memory_space<vmem>>) attributes {dimension_semantics = [#tpu.dimension_semantics<parallel>], iteration_bounds = array<i64: 3>, scalar_prefetch = 0 : i64, scratch_operands = 0 : i64, tpu.core_type = #tpu.core_type<tc>, window_params = [{transform_indices = @transform_0, window_bounds = array<i64: 1, 128, 128>}, {transform_indices = @transform_1, window_bounds = array<i64: 1, 128, 1>}, {pipeline_mode = #tpu.pipeline_mode<synchronous>, transform_indices = @transform_2, window_bounds = array<i64: 128, 16>}, {pipeline_mode = #tpu.pipeline_mode<synchronous>, transform_indices = @transform_3, window_bounds = array<i64: 16, 64>}, {pipeline_mode = #tpu.pipeline_mode<synchronous>, transform_indices = @transform_4, window_bounds = array<i64: 1, 64>}, {pipeline_mode = #tpu.pipeline_mode<synchronous>, transform_indices = @transform_5, window_bounds = array<i64: 64, 4>}, {pipeline_mode = #tpu.pipeline_mode<synchronous>, transform_indices = @transform_6, window_bounds = array<i64: 1, 4>}, {pipeline_mode = #tpu.pipeline_mode<synchronous>, transform_indices = @transform_7, window_bounds = array<i64: 128, 4>}, {transform_indices = @transform_8, window_bounds = array<i64: 1, 1, 128>}]} {
    %c0 = arith.constant 0 : index
    %c0_0 = arith.constant 0 : index
    %c0_1 = arith.constant 0 : index
    %0 = vector.load %arg1[%c0, %c0_0, %c0_1] : memref<1x128x128xbf16, #tpu.memory_space<vmem>>, vector<1x128x128xbf16>
    %1 = vector.shape_cast %0 : vector<1x128x128xbf16> to vector<128x128xbf16>
    %c0_2 = arith.constant 0 : index
    %c0_3 = arith.constant 0 : index
    %c0_4 = arith.constant 0 : index
    %2 = vector.load %arg2[%c0_2, %c0_3, %c0_4] : memref<1x128x1xf32, #tpu.memory_space<vmem>>, vector<1x128x1xf32>
    %3 = vector.shape_cast %2 : vector<1x128x1xf32> to vector<128x1xf32>
    %c0_5 = arith.constant 0 : index
    %c0_6 = arith.constant 0 : index
    %4 = vector.load %arg3[%c0_5, %c0_6] : memref<128x16xbf16, #tpu.memory_space<vmem>>, vector<128x16xbf16>
    %c0_7 = arith.constant 0 : index
    %c0_8 = arith.constant 0 : index
    %5 = vector.load %arg4[%c0_7, %c0_8] : memref<16x64xbf16, #tpu.memory_space<vmem>>, vector<16x64xbf16>
    %cst = arith.constant dense<0.000000e+00> : vector<128x64xf32>
    %6 = tpu.matmul %4, %5, %cst {dimension_numbers = #tpu.dot_dimension_numbers<[1], [0], [0], [1], [0, 0, 1, 1], [], []>} : vector<128x16xbf16>, vector<16x64xbf16>, vector<128x64xf32> -> vector<128x64xf32>
    %7 = vector.broadcast %3 : vector<128x1xf32> to vector<128x64xf32>
    %8 = arith.mulf %7, %6 : vector<128x64xf32>
    %9 = arith.truncf %8 : vector<128x64xf32> to vector<128x64xbf16>
    %cst_9 = arith.constant dense<0.000000e+00> : vector<128x64xf32>
    %10 = tpu.matmul %1, %9, %cst_9 {dimension_numbers = #tpu.dot_dimension_numbers<[1], [0], [0], [1], [0, 0, 1, 1], [], []>} : vector<128x128xbf16>, vector<128x64xbf16>, vector<128x64xf32> -> vector<128x64xf32>
    %11 = vector.broadcast %3 : vector<128x1xf32> to vector<128x64xf32>
    %12 = arith.mulf %11, %10 : vector<128x64xf32>
    %c0_10 = arith.constant 0 : index
    %c0_11 = arith.constant 0 : index
    %13 = vector.load %arg5[%c0_10, %c0_11] : memref<1x64xf32, #tpu.memory_space<vmem>>, vector<1x64xf32>
    %14 = vector.broadcast %13 : vector<1x64xf32> to vector<128x64xf32>
    %15 = arith.addf %12, %14 : vector<128x64xf32>
    %cst_12 = arith.constant 0.000000e+00 : f32
    %16 = vector.broadcast %cst_12 : f32 to vector<128x64xf32>
    %17 = arith.maximumf %15, %16 : vector<128x64xf32>
    %18 = arith.truncf %17 : vector<128x64xf32> to vector<128x64xbf16>
    %c0_13 = arith.constant 0 : index
    %c0_14 = arith.constant 0 : index
    %19 = vector.load %arg6[%c0_13, %c0_14] : memref<64x4xbf16, #tpu.memory_space<vmem>>, vector<64x4xbf16>
    %cst_15 = arith.constant dense<0.000000e+00> : vector<128x4xf32>
    %20 = tpu.matmul %18, %19, %cst_15 {dimension_numbers = #tpu.dot_dimension_numbers<[1], [0], [0], [1], [0, 0, 1, 1], [], []>} : vector<128x64xbf16>, vector<64x4xbf16>, vector<128x4xf32> -> vector<128x4xf32>
    %21 = vector.broadcast %3 : vector<128x1xf32> to vector<128x4xf32>
    %22 = arith.mulf %21, %20 : vector<128x4xf32>
    %23 = arith.truncf %22 : vector<128x4xf32> to vector<128x4xbf16>
    %cst_16 = arith.constant dense<0.000000e+00> : vector<128x4xf32>
    %24 = tpu.matmul %1, %23, %cst_16 {dimension_numbers = #tpu.dot_dimension_numbers<[1], [0], [0], [1], [0, 0, 1, 1], [], []>} : vector<128x128xbf16>, vector<128x4xbf16>, vector<128x4xf32> -> vector<128x4xf32>
    %25 = vector.broadcast %3 : vector<128x1xf32> to vector<128x4xf32>
    %26 = arith.mulf %25, %24 : vector<128x4xf32>
    %c0_17 = arith.constant 0 : index
    %c0_18 = arith.constant 0 : index
    %27 = vector.load %arg7[%c0_17, %c0_18] : memref<1x4xf32, #tpu.memory_space<vmem>>, vector<1x4xf32>
    %28 = vector.broadcast %27 : vector<1x4xf32> to vector<128x4xf32>
    %29 = arith.addf %26, %28 : vector<128x4xf32>
    %cst_19 = arith.constant dense<0xFF800000> : vector<128xf32>
    %30 = vector.multi_reduction <maximumf>, %29, %cst_19 [1] : vector<128x4xf32> to vector<128xf32>
    %31 = vector.shape_cast %30 : vector<128xf32> to vector<128x1xf32>
    %32 = vector.broadcast %31 : vector<128x1xf32> to vector<128x4xf32>
    %33 = arith.subf %29, %32 : vector<128x4xf32>
    %34 = math.exp %33 : vector<128x4xf32>
    %cst_20 = arith.constant dense<0.000000e+00> : vector<128xf32>
    %35 = vector.multi_reduction <add>, %34, %cst_20 [1] : vector<128x4xf32> to vector<128xf32>
    %36 = vector.shape_cast %35 : vector<128xf32> to vector<128x1xf32>
    %37 = math.log %36 : vector<128x1xf32>
    %38 = vector.broadcast %37 : vector<128x1xf32> to vector<128x4xf32>
    %39 = arith.subf %33, %38 : vector<128x4xf32>
    %c0_21 = arith.constant 0 : index
    %c0_22 = arith.constant 0 : index
    %40 = vector.load %arg8[%c0_21, %c0_22] : memref<128x4xf32, #tpu.memory_space<vmem>>, vector<128x4xf32>
    %41 = arith.mulf %39, %40 : vector<128x4xf32>
    %42 = vector.shape_cast %41 : vector<128x4xf32> to vector<1x128x4xf32>
    %cst_23 = arith.constant dense<0.000000e+00> : vector<1xf32>
    %43 = vector.multi_reduction <add>, %42, %cst_23 [1, 2] : vector<1x128x4xf32> to vector<1xf32>
    %44 = vector.shape_cast %43 : vector<1xf32> to vector<1x1x1xf32>
    %45 = vector.extract %44[0, 0, 0] : f32 from vector<1x1x1xf32>
    %cst_24 = arith.constant 0.000000e+00 : f32
    %46 = arith.subf %cst_24, %45 : f32
    %cst_25 = arith.constant 7.812500e-03 : f32
    %47 = arith.mulf %46, %cst_25 : f32
    %48 = vector.broadcast %47 : f32 to vector<1x1x128xf32>
    %c0_26 = arith.constant 0 : index
    %c0_27 = arith.constant 0 : index
    %c0_28 = arith.constant 0 : index
    %49 = vector.load %arg9[%c0_26, %c0_27, %c0_28] : memref<1x1x128xf32, #tpu.memory_space<vmem>>, vector<1x1x128xf32>
    tpu.vector_store %arg9[%c0_26, %c0_27, %c0_28], %48 {strides = array<i32>} : memref<1x1x128xf32, #tpu.memory_space<vmem>>, vector<1x1x128xf32>,
    return
  }
  func.func @transform_0(%arg0: i32) -> (i32, i32, i32) {
    %c0_i32 = arith.constant 0 : i32
    %c0_i32_0 = arith.constant 0 : i32
    %c0_i32_1 = arith.constant 0 : i32
    return %arg0, %c0_i32, %c0_i32_0 : i32, i32, i32
  }
  func.func @transform_1(%arg0: i32) -> (i32, i32, i32) {
    %c0_i32 = arith.constant 0 : i32
    %c0_i32_0 = arith.constant 0 : i32
    %c0_i32_1 = arith.constant 0 : i32
    return %arg0, %c0_i32, %c0_i32_0 : i32, i32, i32
  }
  func.func @transform_2(%arg0: i32) -> (i32, i32) {
    %c0_i32 = arith.constant 0 : i32
    %c0_i32_0 = arith.constant 0 : i32
    %c0_i32_1 = arith.constant 0 : i32
    return %c0_i32, %c0_i32_0 : i32, i32
  }
  func.func @transform_3(%arg0: i32) -> (i32, i32) {
    %c0_i32 = arith.constant 0 : i32
    %c0_i32_0 = arith.constant 0 : i32
    %c0_i32_1 = arith.constant 0 : i32
    return %c0_i32, %c0_i32_0 : i32, i32
  }
  func.func @transform_4(%arg0: i32) -> (i32, i32) {
    %c0_i32 = arith.constant 0 : i32
    %c0_i32_0 = arith.constant 0 : i32
    %c0_i32_1 = arith.constant 0 : i32
    return %c0_i32, %c0_i32_0 : i32, i32
  }
  func.func @transform_5(%arg0: i32) -> (i32, i32) {
    %c0_i32 = arith.constant 0 : i32
    %c0_i32_0 = arith.constant 0 : i32
    %c0_i32_1 = arith.constant 0 : i32
    return %c0_i32, %c0_i32_0 : i32, i32
  }
  func.func @transform_6(%arg0: i32) -> (i32, i32) {
    %c0_i32 = arith.constant 0 : i32
    %c0_i32_0 = arith.constant 0 : i32
    %c0_i32_1 = arith.constant 0 : i32
    return %c0_i32, %c0_i32_0 : i32, i32
  }
  func.func @transform_7(%arg0: i32) -> (i32, i32) {
    %c0_i32 = arith.constant 0 : i32
    %c0_i32_0 = arith.constant 0 : i32
    %c0_i32_1 = arith.constant 0 : i32
    return %c0_i32, %c0_i32_0 : i32, i32
  }
  func.func @transform_8(%arg0: i32) -> (i32, i32, i32) {
    %c0_i32 = arith.constant 0 : i32
    %c0_i32_0 = arith.constant 0 : i32
    %c0_i32_1 = arith.constant 0 : i32
    return %arg0, %c0_i32, %c0_i32_0 : i32, i32, i32
  }
}

</mosaic_0001>

<bundles_post_ra>
// kernel: model_forward.1
= control target key start
LH: loop header
LB: loop body
LE: loop exit
PB: predicated region body
PF: predicated region fallthrough
CT: control target
= control target key end

     0   :  { %s1874_s27 = smov 0   ;;  %s2372_s0 = inlined_call_operand.vmem [shape: bf16[3,128,128], index: 0, kind: input, shape index: {}]   ;;  %s2373_s1 = inlined_call_operand.vmem [shape: f32[3,128,1], index: 1, kind: input, shape index: {}]   ;;  %s2374_s2 = inlined_call_operand.vmem [shape: bf16[128,16], index: 2, kind: input, shape index: {}]   ;;  %s2375_s3 = inlined_call_operand.vmem [shape: bf16[16,64], index: 3, kind: input, shape index: {}]   ;;  %s2376_s4 = inlined_call_operand.vmem [shape: f32[1,64], index: 4, kind: input, shape index: {}]   ;;  %s2377_s5 = inlined_call_operand.vmem [shape: bf16[64,4], index: 5, kind: input, shape index: {}]   ;;  %s2378_s6 = inlined_call_operand.vmem [shape: f32[1,4], index: 6, kind: input, shape index: {}]   ;;  %s2379_s7 = inlined_call_operand.vmem [shape: f32[128,4], index: 7, kind: input, shape index: {}]   ;;  %s2380_s8 = inlined_call_operand.vmem [shape: f32[3,1,128], index: 8, kind: output, shape index: {}]  }
   0x1 LB: > { %s1495_s28 = sadd.s32 4294967295, %s1826_s27   ;;  %p1499_p0 = scmp.ge.s32.totalorder %s1826_s27, 1  ;;  %s1826_s27 = sphi %s1874_s27, %s18_s27  }
   0x2   : > { %p272_p1 = scmp.lt.s32.totalorder %s1826_s27, 4 }
   0x4   : > { %p273_p2 = pnand %p1499_p0, %p272_p1 }
   0x5   : > { %v1735_v0 = vld [vmem:[%s2375_s3] sm:$0xff] (!%p273_p2)   ;;  %vm419_vm0 = vcmask (!%p273_p2), 130048   ;;  %v1737_v2 = vld [vmem:[%s2374_s2 + $0x8] sm:$0xff] (!%p273_p2)   ;;  %v1828_v3 = vmov (!%p273_p2), 0   ;;  %p309_p3 = scmp.lt.s32.totalorder (!%p273_p2), %s1495_s28, 2  ;;  %v1738_v4 = vld [vmem:[%s2374_s2 + $0x10] sm:$0xff] (!%p273_p2)  }
   0x6   : > { %276 = sbr.rel (%p273_p2) target bundleno = 1516 (0x5ec), region = 52  ;;  %v1736_v1 = vld [vmem:[%s2374_s2] sm:$0xff] (!%p273_p2)   ;;  %1600 = vmatprep.subr.bf16.mxu0 (!%p273_p2), %v1735_v0  ;;  %1733 = vset.pattern.permute.xlu0 (!%p273_p2), %v1828_v3  ;;  %v1739_v7 = vld [vmem:[%s2374_s2 + $0x18] sm:$0xff] (!%p273_p2)   ;;  %v1741_v13 = vld [vmem:[%s2374_s2 + $0x28] sm:$0xff] (!%p273_p2)   ;;  %vm885_vm1 = vcmask (!%p273_p2), 523264   ;;  %vm1167_vm2 = vcmask (!%p273_p2), 31744  }
   0x7   : > { %1601 = vmatpush3.bf16.msra.mxu0 (!%p273_p2), %v1735_v0  ;;  %1602 = vmatprep.mubr.msk.bf16.mxu0 (!%p273_p2), %vm419_vm0, %v1736_v1  ;;  %v1740_v8 = vld [vmem:[%s2374_s2 + $0x20] sm:$0xff] (!%p273_p2)   ;;  %v1742_v14 = vld [vmem:[%s2374_s2 + $0x30] sm:$0xff] (!%p273_p2)   ;;  %v1743_v19 = vld [vmem:[%s2374_s2 + $0x38] sm:$0xff] (!%p273_p2)  }
   0x8   : > { %1734 = vset.pattern.permute.xlu1 (!%p273_p2), %v1828_v3  ;;  %v1752_v27 = vld [vmem:[%s2377_s5] sm:$0xff] (!%p273_p2)   ;;  %v1753_v28 = vld [vmem:[%s2377_s5 + $0x8] sm:$0xff] (!%p273_p2)   ;;  %v1754_v29 = vld [vmem:[%s2377_s5 + $0x10] sm:$0xff] (!%p273_p2)  }
   0x9   : > { %1650 = vmatprep.subr.bf16.mxu0 (!%p273_p2), %v1752_v27 }
   0xa   : > { %1603 = vmatmul.mubr.msk.bf16.vlgmr.msra.gmra.mrb[0].mxu0 (!%p273_p2), %vm419_vm0, %v1737_v2 }
   0xb   : > { %1606 = vmatprep.mubr.msk.bf16.mxu0 (!%p273_p2), %vm419_vm0, %v1738_v4  ;;  %1651 = vmatpush3.bf16.msra.mxu0 (!%p273_p2), %v1752_v27 }
   0xc   : > { %1652 = vmatprep.subr.bf16.mxu0 (!%p273_p2), %v1753_v28 }
   0xd   : > { %s2382_s28 = smov (!%p309_p3, %s1495_s28), 2 }
   0xe   : > { %s1546_s15 = sshll.u32 %s2382_s28, 7  ;;  %s1545_s9 = sshll.u32 %s2382_s28, 6 }
   0xf   : > { %s1903_s18 = scalar_lea.vmem %s2373_s1, %s1546_s15  ;;  %s1945_s12 = scalar_lea.vmem %s2372_s0, %s1545_s9  ;;  %1653 = vmatpush3.bf16.msra.mxu0 %v1753_v28 }
  0x10   : > { %v339_v5 = vld [vmem:[%s1903_s18] sm:$0xff]  ;;  %v341_v6 = vld [vmem:[%s1903_s18 + $0x10] sm:$0xff]  ;;  %v340_v9 = vld [vmem:[%s1903_s18 + $0x8] sm:$0xff]  ;;  %1654 = vmatprep.subr.bf16.mxu0 %v1754_v29  ;;  %s321_s21 = scalar_lea.vmem %s2380_s8, %s2382_s28 }
  0x11   : > { %543 = vperm.xlu0 %1733, %v339_v5   ;;  %553 = vperm.xlu1 %1734, %v341_v6   ;;  %v342_v10 = vld [vmem:[%s1903_s18 + $0x18] sm:$0xff]  ;;  %v343_v11 = vld [vmem:[%s1903_s18 + $0x20] sm:$0xff]  ;;  %v344_v12 = vld [vmem:[%s1903_s18 + $0x28] sm:$0xff] }
  0x12   : > { %1607 = vmatmul.mubr.msk.bf16.gmra.mrb[4].mxu0 %vm419_vm0, %v1739_v7  ;;  %v345_v15 = vld [vmem:[%s1903_s18 + $0x30] sm:$0xff]  ;;  %v346_v16 = vld [vmem:[%s1903_s18 + $0x38] sm:$0xff]  ;;  %v347_v17 = vld [vmem:[%s1903_s18 + $0x40] sm:$0xff] }
  0x13   : > { %1610 = vmatprep.mubr.msk.bf16.mxu0 %vm419_vm0, %v1740_v8  ;;  %v348_v18 = vld [vmem:[%s1903_s18 + $0x48] sm:$0xff]  ;;  %v349_v20 = vld [vmem:[%s1903_s18 + $0x50] sm:$0xff]  ;;  %v350_v21 = vld [vmem:[%s1903_s18 + $0x58] sm:$0xff]  ;;  %1655 = vmatpush3.bf16.msra.mxu0 %v1754_v29 }
  0x14   : > { %v351_v22 = vld [vmem:[%s1903_s18 + $0x60] sm:$0xff]  ;;  %v352_v23 = vld [vmem:[%s1903_s18 + $0x68] sm:$0xff]  ;;  %v353_v24 = vld [vmem:[%s1903_s18 + $0x70] sm:$0xff] }
  0x15   : > { %548 = vperm.xlu0 %1733, %v340_v9   ;;  %558 = vperm.xlu1 %1734, %v342_v10   ;;  %v354_v25 = vld [vmem:[%s1903_s18 + $0x78] sm:$0xff]  ;;  %v1948_v26 = vld [vmem:[%s1945_s12] sm:$0xff]   ;;  %v2022_v27 = vld [vmem:[%s1945_s12 + $0x28] sm:$0xff]  }
  0x16   : > { %1634 = vmatprep.mubr.bf16.mxu1 %v1948_v26  ;;  %v2025_v28 = vld [vmem:[%s1945_s12 + $0x30] sm:$0xff]   ;;  %v2030_v29 = vld [vmem:[%s1945_s12 + $0x38] sm:$0xff]  }
  0x19   : > { %563 = vperm.xlu0 %1733, %v343_v11   ;;  %568 = vperm.xlu1 %1734, %v344_v12  }
  0x1a   : > { %1611 = vmatmul.mubr.msk.bf16.gmra.mrb[8].mxu0 %vm419_vm0, %v1741_v13 }
  0x1b   : > { %1614 = vmatprep.mubr.msk.bf16.mxu0 %vm419_vm0, %v1742_v14 }
  0x1d   : > { %573 = vperm.xlu0 %1733, %v345_v15   ;;  %578 = vperm.xlu1 %1734, %v346_v16  }
  0x21   : > { %583 = vperm.xlu0 %1733, %v347_v17   ;;  %588 = vperm.xlu1 %1734, %v348_v18  }
  0x22   : > { %1615 = vmatmul.mubr.msk.bf16.gmra.mrb[12].mxu0 %vm419_vm0, %v1743_v19 }
  0x25   : > { %593 = vperm.xlu0 %1733, %v349_v20   ;;  %598 = vperm.xlu1 %1734, %v350_v21  }
  0x29   : > { %603 = vperm.xlu0 %1733, %v351_v22   ;;  %608 = vperm.xlu1 %1734, %v352_v23   ;;  %v2009_v22 = vld [vmem:[%s1945_s12 + $0x8] sm:$0xff]   ;;  %v1746_v23 = vld [vmem:[%s1945_s12 + $0x10] sm:$0xff]  }
  0x2d   : > { %613 = vperm.xlu0 %1733, %v353_v24   ;;  %618 = vperm.xlu1 %1734, %v354_v25   ;;  %v2014_v24 = vld [vmem:[%s1945_s12 + $0x18] sm:$0xff]   ;;  %v2017_v25 = vld [vmem:[%s1945_s12 + $0x20] sm:$0xff]  }
  0x90   : > { %v1960_v30 = vpop.permute.xlu0 %543  ;;  %v1962_v31 = vpop.permute.xlu1 %553 }
  0x94   : > { %v1964_v32 = vpop.permute.xlu0 %548  ;;  %v1966_v33 = vpop.permute.xlu1 %558 }
  0x98   : > { %v1968_v34 = vpop.permute.xlu0 %563  ;;  %v1970_v35 = vpop.permute.xlu1 %568 }
  0x9c   : > { %v1972_v37 = vpop.permute.xlu0 %573  ;;  %v1974_v39 = vpop.permute.xlu1 %578 }
  0xa0   : > { %v1980_v48 = vpop.permute.xlu0 %583  ;;  %v1982_v49 = vpop.permute.xlu1 %588 }
  0xa4   : > { %v1988_v58 = vpop.permute.xlu0 %593  ;;  %v1990_v60 = vpop.permute.xlu1 %598 }
  0xa8   : > { %v1992_v1 = vpop.permute.xlu0 %603  ;;  %v1996_v5 = vpop.permute.xlu1 %608 }
  0xac   : > { %v2000_v11 = vpop.permute.xlu0 %613  ;;  %v2002_v13 = vpop.permute.xlu1 %618 }
  0xdd   : > { %v1604_v36 = vpop.f32.mrb[0].mxu0 }
  0xde   : > { %v478_v38 = vpop.f32.mrb[1].mxu0  ;;  %v623_v41 = vmul.f32 %v1604_v36, %v1962_v31  ;;  %v1755_v36 = vld [vmem:[%s2377_s5 + $0x18] sm:$0xff]  }
  0xdf   : > { %v1605_v40 = vpop.f32.mrb[2].mxu0  ;;  %v621_v44 = vmul.f32 %v1960_v30, %v478_v38  ;;  %1656 = vmatprep.subr.bf16.mxu0 %v1755_v36 }
  0xe0   : > { %v624_v42 = vmul.f32 %v1605_v40, %v1966_v33  ;;  %v481_v43 = vpop.f32.mrb[3].mxu0  ;;  %1657 = vmatpush3.bf16.msra.mxu0 %v1755_v36  ;;  %v2039_v40 = vld [vmem:[%s2376_s4] ss:$0 sm:$0xff] }
  0xe1   : > { %v622_v45 = vmul.f32 %v1964_v32, %v481_v43 }
  0xe2   : > { %v638_v46 = vpack.c.bf16 %v624_v42, %v623_v41 }
  0xe3   : > { %v637_v47 = vpack.c.bf16 %v622_v45, %v621_v44 }
  0xe5   : > { %v1608_v50 = vpop.f32.mrb[4].mxu0  ;;  %1618 = vmatprep.subr.bf16.mxu1 %v637_v47 }
  0xe6   : > { %v494_v51 = vpop.f32.mrb[5].mxu0  ;;  %1619 = vmatpush3.bf16.msra.mxu1 %v637_v47  ;;  %v627_v53 = vmul.f32 %v1608_v50, %v1972_v37 }
  0xe7   : > { %v1609_v52 = vpop.f32.mrb[6].mxu0  ;;  %1620 = vmatprep.subr.bf16.mxu1 %v638_v46  ;;  %v625_v56 = vmul.f32 %v1968_v34, %v494_v51 }
  0xe8   : > { %v628_v54 = vmul.f32 %v1609_v52, %v1974_v39  ;;  %v497_v55 = vpop.f32.mrb[7].mxu0 }
  0xe9   : > { %v626_v57 = vmul.f32 %v1970_v35, %v497_v55 }
  0xea   : > { %v640_v59 = vpack.c.bf16 %v628_v54, %v627_v53  ;;  %1621 = vmatpush3.bf16.msra.mxu1 %v638_v46 }
  0xeb   : > { %v639_v61 = vpack.c.bf16 %v626_v57, %v625_v56 }
  0xed   : > { %v1612_v62 = vpop.f32.mrb[8].mxu0  ;;  %1622 = vmatprep.subr.bf16.mxu1 %v639_v61 }
  0xee   : > { %v510_v63 = vpop.f32.mrb[9].mxu0  ;;  %1623 = vmatpush3.bf16.msra.mxu1 %v639_v61  ;;  %v631_v2 = vmul.f32 %v1612_v62, %v1988_v58 }
  0xef   : > { %v1613_v0 = vpop.f32.mrb[10].mxu0  ;;  %1624 = vmatprep.subr.bf16.mxu1 %v640_v59  ;;  %v629_v6 = vmul.f32 %v1980_v48, %v510_v63 }
  0xf0   : > { %v632_v3 = vmul.f32 %v1613_v0, %v1990_v60  ;;  %v513_v4 = vpop.f32.mrb[11].mxu0 }
  0xf1   : > { %v630_v7 = vmul.f32 %v1982_v49, %v513_v4 }
  0xf2   : > { %v642_v8 = vpack.c.bf16 %v632_v3, %v631_v2  ;;  %1625 = vmatpush3.bf16.msra.mxu1 %v640_v59 }
  0xf3   : > { %v641_v9 = vpack.c.bf16 %v630_v7, %v629_v6 }
  0xf5   : > { %v1616_v10 = vpop.f32.mrb[12].mxu0  ;;  %1626 = vmatprep.subr.bf16.mxu1 %v641_v9 }
  0xf6   : > { %v526_v12 = vpop.f32.mrb[13].mxu0  ;;  %1627 = vmatpush3.bf16.msra.mxu1 %v641_v9  ;;  %v635_v15 = vmul.f32 %v1616_v10, %v2000_v11 }
  0xf7   : > { %v1617_v14 = vpop.f32.mrb[14].mxu0  ;;  %1628 = vmatprep.subr.bf16.mxu1 %v642_v8  ;;  %v633_v18 = vmul.f32 %v1992_v1, %v526_v12 }
  0xf8   : > { %v636_v16 = vmul.f32 %v1617_v14, %v2002_v13  ;;  %v529_v17 = vpop.f32.mrb[15].mxu0 }
  0xf9   : > { %v634_v19 = vmul.f32 %v1996_v5, %v529_v17 }
  0xfa   : > { %v644_v20 = vpack.c.bf16 %v636_v16, %v635_v15  ;;  %1629 = vmatpush3.bf16.msra.mxu1 %v642_v8 }
  0xfb   : > { %v643_v21 = vpack.c.bf16 %v634_v19, %v633_v18 }
  0xfd   : > { %1630 = vmatprep.subr.bf16.mxu1 %v643_v21 }
  0xfe   : > { %1631 = vmatpush3.bf16.msra.mxu1 %v643_v21 }
  0xff   : > { %1632 = vmatprep.subr.bf16.mxu1 %v644_v20 }
 0x102   : > { %1633 = vmatpush3.bf16.msra.mxu1 %v644_v20 }
 0x105   : > { %1635 = vmatmul.mubr.bf16.vlgmr.msra.gmra.mrb[0].mxu1 %v2009_v22 }
 0x106   : > { %1638 = vmatprep.mubr.bf16.mxu1 %v1746_v23 }
 0x10d   : > { %1639 = vmatmul.mubr.bf16.gmra.mrb[4].mxu1 %v2014_v24 }
 0x10e   : > { %1642 = vmatprep.mubr.bf16.mxu1 %v2017_v25 }
 0x115   : > { %1643 = vmatmul.mubr.bf16.gmra.mrb[8].mxu1 %v2022_v27 }
 0x116   : > { %1646 = vmatprep.mubr.bf16.mxu1 %v2025_v28 }
 0x11d   : > { %1647 = vmatmul.mubr.bf16.gmra.mrb[12].mxu1 %v2030_v29 }
 0x11e   : > { %1694 = vmatprep.mubr.bf16.mxu1 %v1746_v23 }
 0x1d8   : > { %v1636_v38 = vpop.f32.mrb[0].mxu1 }
 0x1d9   : > { %v792_v41 = vmul.f32 %v1636_v38, %v1962_v31  ;;  %v727_v42 = vpop.f32.mrb[1].mxu1 }
 0x1da   : > { %v790_v43 = vmul.f32 %v727_v42, %v1960_v30  ;;  %v1637_v44 = vpop.f32.mrb[2].mxu1 }
 0x1db   : > { %v815_v45 = vadd.f32 %v2039_v40, %v792_v41  ;;  %v793_v46 = vmul.f32 %v1637_v44, %v1966_v33  ;;  %v730_v47 = vpop.f32.mrb[3].mxu1 }
 0x1dc   : > { %v813_v50 = vadd.f32 %v2039_v40, %v790_v43  ;;  %v791_v51 = vmul.f32 %v730_v47, %v1964_v32 }
 0x1dd   : > { %v816_v52 = vadd.f32 %v2039_v40, %v793_v46  ;;  %v831_v54 = vmax.f32 %v815_v45, 0.0 }
 0x1de   : > { %v814_v53 = vadd.f32 %v2039_v40, %v791_v51  ;;  %v829_v56 = vmax.f32 %v813_v50, 0.0 }
 0x1df   : > { %v832_v55 = vmax.f32 %v816_v52, 0.0 }
 0x1e0   : > { %v830_v57 = vmax.f32 %v814_v53, 0.0  ;;  %v1640_v59 = vpop.f32.mrb[4].mxu1 }
 0x1e1   : > { %v846_v61 = vpack.c.bf16 %v832_v55, %v831_v54  ;;  %v796_v62 = vmul.f32 %v1640_v59, %v1972_v37  ;;  %v743_v63 = vpop.f32.mrb[5].mxu1 }
 0x1e2   : > { %v845_v0 = vpack.c.bf16 %v830_v57, %v829_v56  ;;  %v794_v2 = vmul.f32 %v743_v63, %v1968_v34  ;;  %v1641_v3 = vpop.f32.mrb[6].mxu1 }
 0x1e3   : > { %v819_v4 = vadd.f32 %v2039_v40, %v796_v62  ;;  %v797_v6 = vmul.f32 %v1641_v3, %v1974_v39  ;;  %v746_v7 = vpop.f32.mrb[7].mxu1 }
 0x1e4   : > { %v817_v8 = vadd.f32 %v2039_v40, %v794_v2  ;;  %v795_v9 = vmul.f32 %v746_v7, %v1970_v35  ;;  %1658 = vmatprep.mubr.msk.bf16.mxu0 %vm885_vm1, %v845_v0 }
 0x1e5   : > { %v820_v10 = vadd.f32 %v2039_v40, %v797_v6  ;;  %1659 = vmatmul.mubr.msk.bf16.vlgmr.msra.gmra.mrb[16].mxu0 %vm885_vm1, %v846_v61  ;;  %v835_v14 = vmax.f32 %v819_v4, 0.0 }
 0x1e6   : > { %v818_v12 = vadd.f32 %v2039_v40, %v795_v9  ;;  %v833_v16 = vmax.f32 %v817_v8, 0.0 }
 0x1e7   : > { %v836_v15 = vmax.f32 %v820_v10, 0.0 }
 0x1e8   : > { %v834_v17 = vmax.f32 %v818_v12, 0.0  ;;  %v1644_v18 = vpop.f32.mrb[8].mxu1 }
 0x1e9   : > { %v848_v19 = vpack.c.bf16 %v836_v15, %v835_v14  ;;  %v800_v20 = vmul.f32 %v1644_v18, %v1988_v58  ;;  %v759_v21 = vpop.f32.mrb[9].mxu1 }
 0x1ea   : > { %v847_v23 = vpack.c.bf16 %v834_v17, %v833_v16  ;;  %v798_v36 = vmul.f32 %v759_v21, %v1980_v48  ;;  %v1645_v38 = vpop.f32.mrb[10].mxu1 }
 0x1eb   : > { %v823_v41 = vadd.f32 %v2039_v40, %v800_v20  ;;  %v801_v42 = vmul.f32 %v1645_v38, %v1990_v60  ;;  %v762_v43 = vpop.f32.mrb[11].mxu1 }
 0x1ec   : > { %v821_v44 = vadd.f32 %v2039_v40, %v798_v36  ;;  %v799_v45 = vmul.f32 %v762_v43, %v1982_v49  ;;  %1662 = vmatprep.mubr.msk.bf16.mxu0 %vm885_vm1, %v847_v23 }
 0x1ed   : > { %v824_v46 = vadd.f32 %v2039_v40, %v801_v42  ;;  %1663 = vmatmul.mubr.msk.bf16.gmra.mrb[20].mxu0 %vm885_vm1, %v848_v19  ;;  %v839_v50 = vmax.f32 %v823_v41, 0.0 }
 0x1ee   : > { %v822_v47 = vadd.f32 %v2039_v40, %v799_v45  ;;  %v837_v52 = vmax.f32 %v821_v44, 0.0 }
 0x1ef   : > { %v840_v51 = vmax.f32 %v824_v46, 0.0 }
 0x1f0   : > { %v838_v53 = vmax.f32 %v822_v47, 0.0  ;;  %v1648_v54 = vpop.f32.mrb[12].mxu1 }
 0x1f1   : > { %v850_v55 = vpack.c.bf16 %v840_v51, %v839_v50  ;;  %v804_v56 = vmul.f32 %v1648_v54, %v2000_v11  ;;  %v775_v57 = vpop.f32.mrb[13].mxu1 }
 0x1f2   : > { %v849_v59 = vpack.c.bf16 %v838_v53, %v837_v52  ;;  %v802_v61 = vmul.f32 %v775_v57, %v1992_v1  ;;  %v1649_v62 = vpop.f32.mrb[14].mxu1 }
 0x1f3   : > { %v827_v63 = vadd.f32 %v2039_v40, %v804_v56  ;;  %v805_v0 = vmul.f32 %v1649_v62, %v2002_v13  ;;  %v778_v2 = vpop.f32.mrb[15].mxu1 }
 0x1f4   : > { %v825_v3 = vadd.f32 %v2039_v40, %v802_v61  ;;  %v803_v4 = vmul.f32 %v778_v2, %v1996_v5  ;;  %1666 = vmatprep.mubr.msk.bf16.mxu0 %vm885_vm1, %v849_v59 }
 0x1f5   : > { %v828_v6 = vadd.f32 %v2039_v40, %v805_v0  ;;  %1667 = vmatmul.mubr.msk.bf16.gmra.mrb[24].mxu0 %vm885_vm1, %v850_v55  ;;  %v843_v8 = vmax.f32 %v827_v63, 0.0 }
 0x1f6   : > { %v826_v7 = vadd.f32 %v2039_v40, %v803_v4  ;;  %v841_v10 = vmax.f32 %v825_v3, 0.0 }
 0x1f7   : > { %v844_v9 = vmax.f32 %v828_v6, 0.0 }
 0x1f8   : > { %v842_v12 = vmax.f32 %v826_v7, 0.0 }
 0x1f9   : > { %v852_v14 = vpack.c.bf16 %v844_v9, %v843_v8 }
 0x1fa   : > { %v851_v15 = vpack.c.bf16 %v842_v12, %v841_v10 }
 0x1fc   : > { %1670 = vmatprep.mubr.msk.bf16.mxu0 %vm885_vm1, %v851_v15 }
 0x1fd   : > { %1671 = vmatmul.mubr.msk.bf16.gmra.mrb[28].mxu0 %vm885_vm1, %v852_v14 }
 0x1fe   : > { %1690 = vmatprep.mubr.bf16.mxu0 %v1948_v26 }
 0x2b8   : > { %v1660_v16 = vpop.f32.mrb[16].mxu0 }
 0x2b9   : > { %v944_v17 = vpop.f32.mrb[17].mxu0  ;;  %v1009_v19 = vmul.f32 %v1660_v16, %v1962_v31 }
 0x2ba   : > { %v1661_v18 = vpop.f32.mrb[18].mxu0  ;;  %v1007_v21 = vmul.f32 %v944_v17, %v1960_v30 }
 0x2bb   : > { %v1010_v20 = vmul.f32 %v1661_v18, %v1966_v33  ;;  %v947_v40 = vpop.f32.mrb[19].mxu0  ;;  %v2107_v18 = vld [vmem:[%s2378_s6] ss:$0 sm:$0xff] }
 0x2bc   : > { %v1008_v23 = vmul.f32 %v947_v40, %v1964_v32 }
 0x2bd   : > { %v1024_v36 = vpack.c.bf16 %v1010_v20, %v1009_v19 }
 0x2be   : > { %v1023_v38 = vpack.c.bf16 %v1008_v23, %v1007_v21 }
 0x2c0   : > { %v1664_v41 = vpop.f32.mrb[20].mxu0  ;;  %1674 = vmatprep.subr.bf16.mxu0 %v1023_v38  ;;  %1706 = vmatprep.subr.bf16.mxu1 %v1023_v38 }
 0x2c1   : > { %v960_v42 = vpop.f32.mrb[21].mxu0  ;;  %1675 = vmatpush3.bf16.msra.mxu0 %v1023_v38  ;;  %1714 = vmatpush3.bf16.msra.mxu1 %v1023_v38  ;;  %v1013_v43 = vmul.f32 %v1664_v41, %v1972_v37 }
 0x2c2   : > { %v1665_v26 = vpop.f32.mrb[22].mxu0  ;;  %1676 = vmatprep.subr.bf16.mxu0 %v1024_v36  ;;  %1707 = vmatprep.subr.bf16.mxu1 %v1024_v36  ;;  %v1011_v46 = vmul.f32 %v960_v42, %v1968_v34 }
 0x2c3   : > { %v1014_v44 = vmul.f32 %v1665_v26, %v1974_v39  ;;  %v963_v45 = vpop.f32.mrb[23].mxu0 }
 0x2c4   : > { %v1012_v47 = vmul.f32 %v963_v45, %v1970_v35 }
 0x2c5   : > { %v1026_v50 = vpack.c.bf16 %v1014_v44, %v1013_v43  ;;  %1677 = vmatpush3.bf16.msra.mxu0 %v1024_v36  ;;  %1715 = vmatpush3.bf16.msra.mxu1 %v1024_v36 }
 0x2c6   : > { %v1025_v51 = vpack.c.bf16 %v1012_v47, %v1011_v46 }
 0x2c8   : > { %v1668_v52 = vpop.f32.mrb[24].mxu0  ;;  %1678 = vmatprep.subr.bf16.mxu0 %v1025_v51  ;;  %1708 = vmatprep.subr.bf16.mxu1 %v1025_v51 }
 0x2c9   : > { %v976_v53 = vpop.f32.mrb[25].mxu0  ;;  %1679 = vmatpush3.bf16.msra.mxu0 %v1025_v51  ;;  %1716 = vmatpush3.bf16.msra.mxu1 %v1025_v51  ;;  %v1017_v55 = vmul.f32 %v1668_v52, %v1988_v58 }
 0x2ca   : > { %v1669_v54 = vpop.f32.mrb[26].mxu0  ;;  %1680 = vmatprep.subr.bf16.mxu0 %v1026_v50  ;;  %1709 = vmatprep.subr.bf16.mxu1 %v1026_v50  ;;  %v1015_v59 = vmul.f32 %v976_v53, %v1980_v48 }
 0x2cb   : > { %v1018_v56 = vmul.f32 %v1669_v54, %v1990_v60  ;;  %v979_v57 = vpop.f32.mrb[27].mxu0 }
 0x2cc   : > { %v1016_v61 = vmul.f32 %v979_v57, %v1982_v49 }
 0x2cd   : > { %v1028_v62 = vpack.c.bf16 %v1018_v56, %v1017_v55  ;;  %1681 = vmatpush3.bf16.msra.mxu0 %v1026_v50  ;;  %1717 = vmatpush3.bf16.msra.mxu1 %v1026_v50 }
 0x2ce   : > { %v1027_v63 = vpack.c.bf16 %v1016_v61, %v1015_v59 }
 0x2d0   : > { %v1672_v0 = vpop.f32.mrb[28].mxu0  ;;  %1682 = vmatprep.subr.bf16.mxu0 %v1027_v63  ;;  %1710 = vmatprep.subr.bf16.mxu1 %v1027_v63 }
 0x2d1   : > { %v992_v2 = vpop.f32.mrb[29].mxu0  ;;  %1683 = vmatpush3.bf16.msra.mxu0 %v1027_v63  ;;  %1718 = vmatpush3.bf16.msra.mxu1 %v1027_v63  ;;  %v1021_v4 = vmul.f32 %v1672_v0, %v2000_v11 }
 0x2d2   : > { %v1673_v3 = vpop.f32.mrb[30].mxu0  ;;  %1684 = vmatprep.subr.bf16.mxu0 %v1028_v62  ;;  %1711 = vmatprep.subr.bf16.mxu1 %v1028_v62  ;;  %v1019_v8 = vmul.f32 %v992_v2, %v1992_v1 }
 0x2d3   : > { %v1022_v6 = vmul.f32 %v1673_v3, %v2002_v13  ;;  %v995_v7 = vpop.f32.mrb[31].mxu0 }
 0x2d4   : > { %v1020_v9 = vmul.f32 %v995_v7, %v1996_v5 }
 0x2d5   : > { %v1030_v10 = vpack.c.bf16 %v1022_v6, %v1021_v4  ;;  %1685 = vmatpush3.bf16.msra.mxu0 %v1028_v62  ;;  %1719 = vmatpush3.bf16.msra.mxu1 %v1028_v62 }
 0x2d6   : > { %v1029_v12 = vpack.c.bf16 %v1020_v9, %v1019_v8 }
 0x2d8   : > { %1686 = vmatprep.subr.bf16.mxu0 %v1029_v12  ;;  %1712 = vmatprep.subr.bf16.mxu1 %v1029_v12 }
 0x2d9   : > { %1687 = vmatpush3.bf16.msra.mxu0 %v1029_v12  ;;  %1720 = vmatpush3.bf16.msra.mxu1 %v1029_v12 }
 0x2da   : > { %1688 = vmatprep.subr.bf16.mxu0 %v1030_v10  ;;  %1713 = vmatprep.subr.bf16.mxu1 %v1030_v10 }
 0x2dd   : > { %1689 = vmatpush3.bf16.msra.mxu0 %v1030_v10  ;;  %1721 = vmatpush3.bf16.msra.mxu1 %v1030_v10 }
 0x2e0   : > { %1691 = vmatmul.mubr.bf16.vlgmr.msra.gmra.mrb[32].mxu0 %v2009_v22  ;;  %1695 = vmatmul.mubr.bf16.vlgmr.msra.gmra.mrb[16].mxu1 %v2014_v24 }
 0x2e1   : > { %1698 = vmatprep.mubr.bf16.mxu1 %v2017_v25 }
 0x2e8   : > { %1699 = vmatmul.mubr.bf16.gmra.mrb[20].mxu1 %v2022_v27 }
 0x2e9   : > { %1702 = vmatprep.mubr.bf16.mxu1 %v2025_v28 }
 0x2f0   : > { %1703 = vmatmul.mubr.bf16.gmra.mrb[24].mxu1 %v2030_v29 }
 0x3b3   : > { %v1692_v14 = vpop.f32.mrb[32].mxu0  ;;  %v1696_v15 = vpop.f32.mrb[16].mxu1 }
 0x3b4   : > { %v1065_v16 = vpop.f32.mrb[33].mxu0  ;;  %v1081_v17 = vpop.f32.mrb[17].mxu1  ;;  %v1130_v22 = vmul.f32 %v1692_v14, %v1962_v31  ;;  %v1134_v36 = vmul.f32 %v1696_v15, %v1972_v37 }
 0x3b5   : > { %v1128_v24 = vmul.f32 %v1065_v16, %v1960_v30  ;;  %v1693_v25 = vpop.f32.mrb[34].mxu0  ;;  %v1697_v19 = vpop.f32.mrb[18].mxu1  ;;  %v1132_v28 = vmul.f32 %v1081_v17, %v1968_v34 }
 0x3b6   : > { %v1068_v27 = vpop.f32.mrb[35].mxu0  ;;  %v1084_v20 = vpop.f32.mrb[19].mxu1  ;;  %v1131_v21 = vmul.f32 %v1693_v25, %v1966_v33  ;;  %v2123_v30 = vadd.f32 %v2107_v18, %v1130_v22  ;;  %v2141_v46 = vadd.f32 %v2107_v18, %v1134_v36 }
 0x3b7   : > { %v1129_v29 = vmul.f32 %v1068_v27, %v1964_v32  ;;  %v2114_v40 = vadd.f32 %v2107_v18, %v1128_v24  ;;  %v2129_v38 = vadd.f32 %v2107_v18, %v1132_v28  ;;  %v1133_v41 = vmul.f32 %v1084_v20, %v1970_v35 }
 0x3b8   : > { %v1174_v26 = vsel %vm1167_vm2, %v2123_v30, -inf  ;;  %v2135_v43 = vadd.f32 %v2107_v18, %v1131_v21  ;;  %v1135_v35 = vmul.f32 %v1697_v19, %v1974_v39 }
 0x3b9   : > { %v1168_v23 = vsel %vm1167_vm2, %v2114_v40, -inf  ;;  %v2120_v31 = vadd.f32 %v2107_v18, %v1129_v29  ;;  %v1180_v45 = vsel %vm1167_vm2, %v2129_v38, -inf  ;;  %v2147_v50 = vadd.f32 %v2107_v18, %v1133_v41 }
 0x3ba   : > { %1169 = vmax.xlane.f32.xlu0 %v1168_v23  ;;  %v1177_v47 = vsel %vm1167_vm2, %v2135_v43, -inf  ;;  %v2159_v57 = vadd.f32 %v2107_v18, %v1135_v35 }
 0x3bb   : > { %v1700_v34 = vpop.f32.mrb[20].mxu1  ;;  %v1171_v32 = vsel %vm1167_vm2, %v2120_v31, -inf  ;;  %v1183_v56 = vsel %vm1167_vm2, %v2147_v50, -inf }
 0x3bc   : > { %v1097_v33 = vpop.f32.mrb[21].mxu1  ;;  %1172 = vmax.xlane.f32.xlu1 %v1171_v32  ;;  %v1138_v51 = vmul.f32 %v1700_v34, %v1988_v58  ;;  %v1189_v63 = vsel %vm1167_vm2, %v2159_v57, -inf }
 0x3bd   : > { %v1701_v42 = vpop.f32.mrb[22].mxu1  ;;  %v1136_v37 = vmul.f32 %v1097_v33, %v1980_v48  ;;  %v1186_v48 = vsel %vm1167_vm2, %v2141_v46, -inf }
 0x3be   : > { %v1100_v44 = vpop.f32.mrb[23].mxu1  ;;  %1175 = vmax.xlane.f32.xlu0 %v1174_v26  ;;  %v2165_v62 = vadd.f32 %v2107_v18, %v1138_v51 }
 0x3bf   : > { %v2153_v53 = vadd.f32 %v2107_v18, %v1136_v37  ;;  %v1137_v39 = vmul.f32 %v1100_v44, %v1982_v49  ;;  %v1139_v49 = vmul.f32 %v1701_v42, %v1990_v60 }
 0x3c0   : > { %1181 = vmax.xlane.f32.xlu1 %v1180_v45 }
 0x3c1   : > { %v1192_v61 = vsel %vm1167_vm2, %v2153_v53, -inf  ;;  %v2171_v0 = vadd.f32 %v2107_v18, %v1137_v39  ;;  %v2183_v6 = vadd.f32 %v2107_v18, %v1139_v49 }
 0x3c2   : > { %1178 = vmax.xlane.f32.xlu0 %v1177_v47 }
 0x3c3   : > { %v1704_v52 = vpop.f32.mrb[24].mxu1  ;;  %v1195_v60 = vsel %vm1167_vm2, %v2171_v0, -inf  ;;  %v1201_v9 = vsel %vm1167_vm2, %v2183_v6, -inf }
 0x3c4   : > { %v1113_v54 = vpop.f32.mrb[25].mxu1  ;;  %1187 = vmax.xlane.f32.xlu1 %v1186_v48  ;;  %v1142_v2 = vmul.f32 %v1704_v52, %v2000_v11 }
 0x3c5   : > { %v1705_v55 = vpop.f32.mrb[26].mxu1  ;;  %v1140_v58 = vmul.f32 %v1113_v54, %v1992_v1  ;;  %v1198_v1 = vsel %vm1167_vm2, %v2165_v62, -inf }
 0x3c6   : > { %v1116_v59 = vpop.f32.mrb[27].mxu1  ;;  %1184 = vmax.xlane.f32.xlu0 %v1183_v56  ;;  %v2188_v11 = vadd.f32 %v2107_v18, %v1142_v2  ;;  %v1143_v8 = vmul.f32 %v1705_v55, %v2002_v13 }
 0x3c7   : > { %v2177_v3 = vadd.f32 %v2107_v18, %v1140_v58  ;;  %v1141_v4 = vmul.f32 %v1116_v59, %v1996_v5 }
 0x3c8   : > { %1193 = vmax.xlane.f32.xlu1 %v1192_v61  ;;  %v1210_v10 = vsel %vm1167_vm2, %v2188_v11, -inf  ;;  %v2201_v14 = vadd.f32 %v2107_v18, %v1143_v8 }
 0x3c9   : > { %v1204_v7 = vsel %vm1167_vm2, %v2177_v3, -inf  ;;  %v2194_v5 = vadd.f32 %v2107_v18, %v1141_v4 }
 0x3ca   : > { %1190 = vmax.xlane.f32.xlu0 %v1189_v63  ;;  %v1213_v13 = vsel %vm1167_vm2, %v2201_v14, -inf }
 0x3cb   : > { %v1207_v12 = vsel %vm1167_vm2, %v2194_v5, -inf }
 0x3cc   : > { %1199 = vmax.xlane.f32.xlu1 %v1198_v1 }
 0x3ce   : > { %1196 = vmax.xlane.f32.xlu0 %v1195_v60 }
 0x3d0   : > { %1205 = vmax.xlane.f32.xlu1 %v1204_v7 }
 0x3d2   : > { %1202 = vmax.xlane.f32.xlu0 %v1201_v9 }
 0x3d4   : > { %1211 = vmax.xlane.f32.xlu1 %v1210_v10 }
 0x3d6   : > { %1208 = vmax.xlane.f32.xlu0 %v1207_v12 }
 0x3da   : > { %1214 = vmax.xlane.f32.xlu0 %v1213_v13 }
 0x447   : > { %v1170_v15 = vpop.xlane.xlu0 %1169 }
 0x448   : > { %v2206_v16 = vsub.f32 %v2114_v40, %v1170_v15 }
 0x449   : > { %v1173_v17 = vpop.xlane.xlu1 %1172 }
 0x44a   : > { %v1232_v22 = vmul.f32 1.442695, %v2206_v16  ;;  %v2210_v24 = vsub.f32 %v2120_v31, %v1173_v17 }
 0x44b   : > { %v1176_v25 = vpop.xlane.xlu0 %1175 }
 0x44c   : > { %1756 = vpow2.f32 %v1232_v22  ;;  %v1234_v18 = vmul.f32 1.442695, %v2210_v24  ;;  %v2214_v19 = vsub.f32 %v2123_v30, %v1176_v25 }
 0x44d   : > { %v1182_v27 = vpop.xlane.xlu1 %1181 }
 0x44e   : > { %1758 = vpow2.f32 %v1234_v18  ;;  %v1236_v20 = vmul.f32 1.442695, %v2214_v19  ;;  %v2218_v28 = vsub.f32 %v2129_v38, %v1182_v27 }
 0x44f   : > { %v1179_v29 = vpop.xlane.xlu0 %1178 }
 0x450   : > { %1760 = vpow2.f32 %v1236_v20  ;;  %v1240_v40 = vmul.f32 1.442695, %v2218_v28  ;;  %v2222_v21 = vsub.f32 %v2135_v43, %v1179_v29 }
 0x451   : > { %v1188_v23 = vpop.xlane.xlu1 %1187 }
 0x452   : > { %1762 = vpow2.f32 %v1240_v40  ;;  %v1238_v31 = vmul.f32 1.442695, %v2222_v21  ;;  %v2226_v30 = vsub.f32 %v2141_v46, %v1188_v23 }
 0x453   : > { %v1185_v36 = vpop.xlane.xlu0 %1184 }
 0x454   : > { %1764 = vpow2.f32 %v1238_v31  ;;  %v1244_v34 = vmul.f32 1.442695, %v2226_v30  ;;  %v2230_v32 = vsub.f32 %v2147_v50, %v1185_v36 }
 0x455   : > { %v1194_v38 = vpop.xlane.xlu1 %1193 }
 0x456   : > { %v1757_v33 = vpop.eup %1756  ;;  %1766 = vpow2.f32 %v1244_v34  ;;  %v1242_v41 = vmul.f32 1.442695, %v2230_v32  ;;  %v2234_v42 = vsub.f32 %v2153_v53, %v1194_v38 }
 0x457   : > { %v1191_v26 = vpop.xlane.xlu0 %1190  ;;  %v1264_v43 = vsel %vm1167_vm2, %v1757_v33, 0.0 }
 0x458   : > { %v1759_v44 = vpop.eup %1758  ;;  %1768 = vpow2.f32 %v1242_v41  ;;  %v1248_v37 = vmul.f32 1.442695, %v2234_v42  ;;  %v2239_v45 = vsub.f32 %v2159_v57, %v1191_v26  ;;  %1265 = vadd.xlane.f32.xlu1 %v1264_v43 }
 0x459   : > { %v1200_v46 = vpop.xlane.xlu1 %1199  ;;  %v1267_v35 = vsel %vm1167_vm2, %v1759_v44, 0.0 }
 0x45a   : > { %v1761_v47 = vpop.eup %1760  ;;  %1770 = vpow2.f32 %v1248_v37  ;;  %v1246_v50 = vmul.f32 1.442695, %v2239_v45  ;;  %v2244_v51 = vsub.f32 %v2165_v62, %v1200_v46  ;;  %1268 = vadd.xlane.f32.xlu0 %v1267_v35 }
 0x45b   : > { %v1197_v52 = vpop.xlane.xlu0 %1196  ;;  %v1270_v48 = vsel %vm1167_vm2, %v1761_v47, 0.0 }
 0x45c   : > { %v1763_v53 = vpop.eup %1762  ;;  %1772 = vpow2.f32 %v1246_v50  ;;  %v1252_v54 = vmul.f32 1.442695, %v2244_v51  ;;  %v2249_v39 = vsub.f32 %v2171_v0, %v1197_v52  ;;  %1271 = vadd.xlane.f32.xlu1 %v1270_v48 }
 0x45d   : > { %v1206_v55 = vpop.xlane.xlu1 %1205  ;;  %v1276_v62 = vsel %vm1167_vm2, %v1763_v53, 0.0  ;;  %v1360_v53 = vld [vmem:[%s2379_s7] sm:$0xff] }
 0x45e   : > { %v1765_v56 = vpop.eup %1764  ;;  %1774 = vpow2.f32 %v1252_v54  ;;  %v1250_v57 = vmul.f32 1.442695, %v2249_v39  ;;  %v2253_v59 = vsub.f32 %v2177_v3, %v1206_v55 }
 0x45f   : > { %v1203_v58 = vpop.xlane.xlu0 %1202  ;;  %v1273_v61 = vsel %vm1167_vm2, %v1765_v56, 0.0 }
 0x460   : > { %v1767_v49 = vpop.eup %1766  ;;  %1776 = vpow2.f32 %v1250_v57  ;;  %v1256_v63 = vmul.f32 1.442695, %v2253_v59  ;;  %v2259_v0 = vsub.f32 %v2183_v6, %v1203_v58  ;;  %1274 = vadd.xlane.f32.xlu0 %v1273_v61  ;;  %1277 = vadd.xlane.f32.xlu1 %v1276_v62  ;;  %v1361_v57 = vld [vmem:[%s2379_s7 + $0x8] sm:$0xff] }
 0x461   : > { %v1212_v2 = vpop.xlane.xlu1 %1211  ;;  %v1282_v8 = vsel %vm1167_vm2, %v1767_v49, 0.0 }
 0x462   : > { %v1769_v1 = vpop.eup %1768  ;;  %1778 = vpow2.f32 %v1256_v63  ;;  %v1254_v3 = vmul.f32 1.442695, %v2259_v0  ;;  %v2263_v4 = vsub.f32 %v2188_v11, %v1212_v2  ;;  %v1362_v2 = vld [vmem:[%s2379_s7 + $0x10] sm:$0xff] }
 0x463   : > { %v1209_v60 = vpop.xlane.xlu0 %1208  ;;  %v1279_v7 = vsel %vm1167_vm2, %v1769_v1, 0.0 }
 0x464   : > { %v1771_v9 = vpop.eup %1770  ;;  %1780 = vpow2.f32 %v1254_v3  ;;  %v1260_v6 = vmul.f32 1.442695, %v2263_v4  ;;  %v2269_v10 = vsub.f32 %v2194_v5, %v1209_v60  ;;  %1280 = vadd.xlane.f32.xlu0 %v1279_v7  ;;  %1283 = vadd.xlane.f32.xlu1 %v1282_v8 }
 0x465   : > { %v1288_v17 = vsel %vm1167_vm2, %v1771_v9, 0.0 }
 0x466   : > { %v1773_v12 = vpop.eup %1772  ;;  %1782 = vpow2.f32 %v1260_v6  ;;  %v1258_v13 = vmul.f32 1.442695, %v2269_v10 }
 0x467   : > { %v1215_v11 = vpop.xlane.xlu0 %1214  ;;  %v1285_v15 = vsel %vm1167_vm2, %v1773_v12, 0.0 }
 0x468   : > { %v1775_v22 = vpop.eup %1774  ;;  %1784 = vpow2.f32 %v1258_v13  ;;  %v2275_v25 = vsub.f32 %v2201_v14, %v1215_v11  ;;  %1286 = vadd.xlane.f32.xlu0 %v1285_v15  ;;  %1289 = vadd.xlane.f32.xlu1 %v1288_v17  ;;  %v1363_v11 = vld [vmem:[%s2379_s7 + $0x18] sm:$0xff] }
 0x469   : > { %v1294_v20 = vsel %vm1167_vm2, %v1775_v22, 0.0  ;;  %v1364_v22 = vld [vmem:[%s2379_s7 + $0x20] sm:$0xff] }
 0x46a   : > { %v1777_v5 = vpop.eup %1776  ;;  %v1262_v18 = vmul.f32 1.442695, %v2275_v25 }
 0x46b   : > { %v1291_v27 = vsel %vm1167_vm2, %v1777_v5, 0.0 }
 0x46c   : > { %v1779_v29 = vpop.eup %1778  ;;  %1786 = vpow2.f32 %v1262_v18  ;;  %1292 = vadd.xlane.f32.xlu0 %v1291_v27  ;;  %1295 = vadd.xlane.f32.xlu1 %v1294_v20 }
 0x46d   : > { %v1300_v31 = vsel %vm1167_vm2, %v1779_v29, 0.0 }
 0x46e   : > { %v1781_v40 = vpop.eup %1780 }
 0x46f   : > { %v1297_v23 = vsel %vm1167_vm2, %v1781_v40, 0.0 }
 0x470   : > { %v1783_v14 = vpop.eup %1782  ;;  %1298 = vadd.xlane.f32.xlu0 %v1297_v23  ;;  %1301 = vadd.xlane.f32.xlu1 %v1300_v31 }
 0x471   : > { %v1306_v38 = vsel %vm1167_vm2, %v1783_v14, 0.0 }
 0x472   : > { %v1785_v36 = vpop.eup %1784 }
 0x473   : > { %v1303_v34 = vsel %vm1167_vm2, %v1785_v36, 0.0  ;;  %v1365_v36 = vld [vmem:[%s2379_s7 + $0x28] sm:$0xff] }
 0x474   : > { %1304 = vadd.xlane.f32.xlu0 %v1303_v34  ;;  %1307 = vadd.xlane.f32.xlu1 %v1306_v38 }
 0x476   : > { %v1787_v33 = vpop.eup %1786 }
 0x477   : > { %v1309_v41 = vsel %vm1167_vm2, %v1787_v33, 0.0 }
 0x478   : > { %1310 = vadd.xlane.f32.xlu0 %v1309_v41 }
 0x4e5   : > { %v1266_v26 = vpop.xlane.xlu1 %1265 }
 0x4e6   : > { %1788 = vlog2.f32 %v1266_v26 }
 0x4e7   : > { %v1269_v43 = vpop.xlane.xlu0 %1268 }
 0x4e8   : > { %1790 = vlog2.f32 %v1269_v43 }
 0x4e9   : > { %v1272_v44 = vpop.xlane.xlu1 %1271 }
 0x4ea   : > { %1792 = vlog2.f32 %v1272_v44 }
 0x4ed   : > { %v1275_v37 = vpop.xlane.xlu0 %1274  ;;  %v1278_v46 = vpop.xlane.xlu1 %1277 }
 0x4ee   : > { %1794 = vlog2.f32 %v1275_v37 }
 0x4ef   : > { %1796 = vlog2.f32 %v1278_v46 }
 0x4f0   : > { %v1789_v35 = vpop.eup %1788 }
 0x4f1   : > { %v1313_v47 = vmul.f32 0.6931472, %v1789_v35  ;;  %v1281_v50 = vpop.xlane.xlu0 %1280  ;;  %v1284_v52 = vpop.xlane.xlu1 %1283 }
 0x4f2   : > { %v1791_v48 = vpop.eup %1790  ;;  %1798 = vlog2.f32 %v1281_v50 }
 0x4f3   : > { %v1344_v54 = vsub.f32 %v2206_v16, %v1313_v47  ;;  %v1315_v55 = vmul.f32 0.6931472, %v1791_v48  ;;  %1800 = vlog2.f32 %v1284_v52 }
 0x4f4   : > { %v1793_v56 = vpop.eup %1792 }
 0x4f5   : > { %v1376_v58 = vmul.f32 %v1360_v53, %v1344_v54  ;;  %v1345_v61 = vsub.f32 %v2210_v24, %v1315_v55  ;;  %v1317_v62 = vmul.f32 0.6931472, %v1793_v56  ;;  %v1287_v49 = vpop.xlane.xlu0 %1286  ;;  %v1290_v63 = vpop.xlane.xlu1 %1289 }
 0x4f6   : > { %1802 = vlog2.f32 %v1287_v49 }
 0x4f7   : > { %v1377_v1 = vmul.f32 %v1361_v57, %v1345_v61  ;;  %v1346_v16 = vsub.f32 %v2214_v19, %v1317_v62  ;;  %1804 = vlog2.f32 %v1290_v63  ;;  %v1392_v7 = vsel %vm1167_vm2, %v1376_v58, 0.0 }
 0x4f8   : > { %v1795_v3 = vpop.eup %1794 }
 0x4f9   : > { %v1797_v60 = vpop.eup %1796  ;;  %v1393_v8 = vsel %vm1167_vm2, %v1377_v1, 0.0  ;;  %v1378_v9 = vmul.f32 %v1362_v2, %v1346_v16  ;;  %v1319_v24 = vmul.f32 0.6931472, %v1795_v3  ;;  %v1293_v6 = vpop.xlane.xlu0 %1292 }
 0x4fa   : > { %v1296_v12 = vpop.xlane.xlu1 %1295  ;;  %v1394_v13 = vadd.f32 %v1393_v8, %v1392_v7  ;;  %v1321_v15 = vmul.f32 0.6931472, %v1797_v60  ;;  %1806 = vlog2.f32 %v1293_v6 }
 0x4fb   : > { %v1395_v19 = vsel %vm1167_vm2, %v1378_v9, 0.0  ;;  %v1347_v17 = vsub.f32 %v2222_v21, %v1319_v24  ;;  %1808 = vlog2.f32 %v1296_v12 }
 0x4fc   : > { %v1799_v5 = vpop.eup %1798  ;;  %v1348_v18 = vsub.f32 %v2218_v28, %v1321_v15  ;;  %v1396_v31 = vadd.f32 %v1395_v19, %v1394_v13  ;;  %v1366_v28 = vld [vmem:[%s2379_s7 + $0x30] sm:$0xff]  ;;  %v1371_v19 = vld [vmem:[%s2379_s7 + $0x58] sm:$0xff] }
 0x4fd   : > { %v1801_v27 = vpop.eup %1800  ;;  %v1379_v20 = vmul.f32 %v1363_v11, %v1347_v17  ;;  %v1323_v29 = vmul.f32 0.6931472, %v1799_v5  ;;  %v1299_v40 = vpop.xlane.xlu0 %1298 }
 0x4fe   : > { %v1302_v23 = vpop.xlane.xlu1 %1301  ;;  %v1380_v14 = vmul.f32 %v1364_v22, %v1348_v18  ;;  %v1325_v21 = vmul.f32 0.6931472, %v1801_v27  ;;  %1810 = vlog2.f32 %v1299_v40 }
 0x4ff   : > { %v1397_v34 = vsel %vm1167_vm2, %v1379_v20, 0.0  ;;  %v1349_v38 = vsub.f32 %v2230_v32, %v1323_v29  ;;  %1812 = vlog2.f32 %v1302_v23  ;;  %v1367_v32 = vld [vmem:[%s2379_s7 + $0x38] sm:$0xff] }
 0x500   : > { %v1803_v33 = vpop.eup %1802  ;;  %v1398_v41 = vadd.f32 %v1397_v34, %v1396_v31  ;;  %v1350_v26 = vsub.f32 %v2226_v30, %v1325_v21  ;;  %v1399_v44 = vsel %vm1167_vm2, %v1380_v14, 0.0  ;;  %v1368_v30 = vld [vmem:[%s2379_s7 + $0x40] sm:$0xff] }
 0x501   : > { %v1805_v43 = vpop.eup %1804  ;;  %v1381_v37 = vmul.f32 %v1365_v36, %v1349_v38  ;;  %v1327_v46 = vmul.f32 0.6931472, %v1803_v33  ;;  %v1305_v35 = vpop.xlane.xlu0 %1304  ;;  %v1373_v36 = vld [vmem:[%s2379_s7 + $0x68] sm:$0xff] }
 0x502   : > { %v1308_v47 = vpop.xlane.xlu1 %1307  ;;  %v1400_v50 = vadd.f32 %v1399_v44, %v1398_v41  ;;  %v1382_v52 = vmul.f32 %v1366_v28, %v1350_v26  ;;  %v1329_v48 = vmul.f32 0.6931472, %v1805_v43  ;;  %1814 = vlog2.f32 %v1305_v35  ;;  %v1375_v44 = vld [vmem:[%s2379_s7 + $0x78] sm:$0xff] }
 0x503   : > { %v1401_v53 = vsel %vm1167_vm2, %v1381_v37, 0.0  ;;  %v1351_v54 = vsub.f32 %v2239_v45, %v1327_v46  ;;  %1816 = vlog2.f32 %v1308_v47  ;;  %v1369_v45 = vld [vmem:[%s2379_s7 + $0x48] sm:$0xff] }
 0x504   : > { %v1807_v55 = vpop.eup %1806  ;;  %v1402_v56 = vadd.f32 %v1401_v53, %v1400_v50  ;;  %v1352_v57 = vsub.f32 %v2234_v42, %v1329_v48  ;;  %v1403_v61 = vsel %vm1167_vm2, %v1382_v52, 0.0  ;;  %v1370_v42 = vld [vmem:[%s2379_s7 + $0x50] sm:$0xff] }
 0x505   : > { %v1809_v58 = vpop.eup %1808  ;;  %v1383_v62 = vmul.f32 %v1367_v32, %v1351_v54  ;;  %v1331_v49 = vmul.f32 0.6931472, %v1807_v55  ;;  %v1311_v63 = vpop.xlane.xlu0 %1310 }
 0x506   : > { %v1404_v2 = vadd.f32 %v1403_v61, %v1402_v56  ;;  %v1384_v1 = vmul.f32 %v1368_v30, %v1352_v57  ;;  %v1333_v16 = vmul.f32 0.6931472, %v1809_v58  ;;  %1818 = vlog2.f32 %v1311_v63 }
 0x507   : > { %v1405_v3 = vsel %vm1167_vm2, %v1383_v62, 0.0  ;;  %v1353_v60 = vsub.f32 %v2249_v39, %v1331_v49 }
 0x508   : > { %v1811_v7 = vpop.eup %1810  ;;  %v1406_v8 = vadd.f32 %v1405_v3, %v1404_v2  ;;  %v1354_v9 = vsub.f32 %v2244_v51, %v1333_v16  ;;  %v1407_v6 = vsel %vm1167_vm2, %v1384_v1, 0.0  ;;  %v1372_v51 = vld [vmem:[%s2379_s7 + $0x60] sm:$0xff] }
 0x509   : > { %v1813_v24 = vpop.eup %1812  ;;  %v1385_v12 = vmul.f32 %v1369_v45, %v1353_v60  ;;  %v1335_v13 = vmul.f32 0.6931472, %v1811_v7 }
 0x50a   : > { %v1408_v11 = vadd.f32 %v1407_v6, %v1406_v8  ;;  %v1386_v15 = vmul.f32 %v1370_v42, %v1354_v9  ;;  %v1337_v39 = vmul.f32 0.6931472, %v1813_v24 }
 0x50b   : > { %v1409_v17 = vsel %vm1167_vm2, %v1385_v12, 0.0  ;;  %v1355_v22 = vsub.f32 %v2259_v0, %v1335_v13 }
 0x50c   : > { %v1815_v5 = vpop.eup %1814  ;;  %v1410_v18 = vadd.f32 %v1409_v17, %v1408_v11  ;;  %v1356_v27 = vsub.f32 %v2253_v59, %v1337_v39  ;;  %v1411_v29 = vsel %vm1167_vm2, %v1386_v15, 0.0  ;;  %v1374_v59 = vld [vmem:[%s2379_s7 + $0x70] sm:$0xff] }
 0x50d   : > { %v1817_v20 = vpop.eup %1816  ;;  %v1387_v40 = vmul.f32 %v1371_v19, %v1355_v22  ;;  %v1339_v23 = vmul.f32 0.6931472, %v1815_v5 }
 0x50e   : > { %v1412_v31 = vadd.f32 %v1411_v29, %v1410_v18  ;;  %v1388_v14 = vmul.f32 %v1372_v51, %v1356_v27  ;;  %v1341_v0 = vmul.f32 0.6931472, %v1817_v20 }
 0x50f   : > { %v1413_v21 = vsel %vm1167_vm2, %v1387_v40, 0.0  ;;  %v1357_v34 = vsub.f32 %v2269_v10, %v1339_v23 }
 0x510   : > { %v1819_v38 = vpop.eup %1818  ;;  %v1358_v28 = vsub.f32 %v2263_v4, %v1341_v0  ;;  %v1414_v33 = vadd.f32 %v1413_v21, %v1412_v31  ;;  %v1415_v43 = vsel %vm1167_vm2, %v1388_v14, 0.0 }
 0x511   : > { %v1389_v41 = vmul.f32 %v1373_v36, %v1357_v34  ;;  %v1343_v26 = vmul.f32 0.6931472, %v1819_v38 }
 0x512   : > { %v1390_v37 = vmul.f32 %v1374_v59, %v1358_v28  ;;  %v1416_v46 = vadd.f32 %v1415_v43, %v1414_v33 }
 0x513   : > { %v1359_v10 = vsub.f32 %v2275_v25, %v1343_v26  ;;  %v1417_v35 = vsel %vm1167_vm2, %v1389_v41, 0.0 }
 0x514   : > { %v1418_v47 = vadd.f32 %v1417_v35, %v1416_v46  ;;  %v1419_v4 = vsel %vm1167_vm2, %v1390_v37, 0.0 }
 0x515   : > { %v1391_v50 = vmul.f32 %v1375_v44, %v1359_v10 }
 0x516   : > { %v1420_v52 = vadd.f32 %v1419_v4, %v1418_v47 }
 0x517   : > { %v1421_v32 = vsel %vm1167_vm2, %v1391_v50, 0.0 }
 0x518   : > { %v1422_v48 = vadd.f32 %v1421_v32, %v1420_v52 }
 0x51a   : > { %1423 = vadd.xlane.f32.xlu1 %v1422_v48 }
 0x5a7   : > { %v1424_v53 = vpop.xlane.xlu1 %1423 }
 0x5a8   : > { %v1425_v54 = vrot.slane %v1424_v53, 4 }
 0x5aa   : > { %v1426_v30 = vadd.f32 %v1425_v54, %v1424_v53 }
 0x5ac   : > { %v1427_v55 = vrot.slane %v1426_v30, 2 }
 0x5ae   : > { %v1428_v56 = vadd.f32 %v1427_v55, %v1426_v30 }
 0x5b0   : > { %v1429_v57 = vrot.slane %v1428_v56, 1 }
 0x5b2   : > { %v1430_v58 = vadd.f32 %v1429_v57, %v1428_v56 }
 0x5b4   : > { %1722 = vpush %v1430_v58 }
 0x5e5   : > { %s1723_s17 = spop %1722 }
 0x5e6   : > { %s1432_s18 = ssub.f32 0.0, %s1723_s17 }
 0x5e8   : > { %s1433_s22 = smul.f32 0.0078125, %s1432_s18 }
 0x5ea   : > { %v1434_v25 = vstv %s1433_s22 }
 0x5eb   : > { %1435 = vst [vmem:[%s321_s21] sm:$0x1] %v1434_v25 }
 0x5ec PF: > { %s18_s27 = sadd.s32 1, %s1826_s27  }
 0x5ed   : > { %p15_p4 = scmp.ge.s32.totalorder %s18_s27, 5  }
 0x5ef   :  { %17 = sbr.rel (!%p15_p4) target bundleno = 1 (0x1), region = 85 }

</bundles_post_ra>
